<compile_context>
chip_gen: v5e
topology: v5e:2x2
jax: 0.10.0
libtpu: 0.0.40
codegen_flags: <defaults>
</compile_context>

<pallas_src>
import numpy as np

import jax
import jax.numpy as jnp
from jax import lax
from jax.experimental import pallas as pl
from jax.experimental.pallas import tpu as pltpu


def _round_up(x, m):
    return ((x + m - 1) // m) * m


def _pad2d(x, rows, cols):
    pr, pc = rows - x.shape[0], cols - x.shape[1]
    if pr == 0 and pc == 0:
        return x
    return jnp.pad(x, ((0, pr), (0, pc)))


def _clip_vmem(v):
    # Keep within physical VMEM on all generations (v7x: 64 MiB per core).
    return int(min(max(v, 8 * 1024 * 1024), 64 * 1024 * 1024))


def _vmem_capacity_bytes():
    try:
        return int(pltpu.get_tpu_info().vmem_capacity_bytes)
    except Exception:  # info unavailable -> assume 128 MiB (v5e/v6e)
        return 128 * 1024 * 1024


def _weight_spec(block_shape, index_map, nbytes):
    """BlockSpec for a constant-index weight.

    Pallas double-buffers inputs by default; for large weights request a
    single buffer (halves its VMEM footprint -- key on v7x's 64 MiB VMEM).
    Falls back to a plain BlockSpec if pipeline_mode is unsupported.
    """
    if nbytes >= (1 << 20):
        try:
            return pl.BlockSpec(block_shape, index_map,
                                pipeline_mode=pl.Buffered(1))
        except Exception:
            pass
    return pl.BlockSpec(block_shape, index_map)


# --------------------------------------------------------------------------
# Tiled matmul + bias:  out = a @ b + bias     (phases 1 and 3)
# --------------------------------------------------------------------------
def _matmul_bias_kernel(a_ref, b_ref, bias_ref, o_ref, acc_ref):
    k = pl.program_id(2)
    prod = jnp.dot(a_ref[...], b_ref[...], preferred_element_type=jnp.float32)

    @pl.when(k == 0)
    def _():                      # overwrite: no separate zero-init store
        acc_ref[...] = prod

    @pl.when(k > 0)
    def _():
        acc_ref[...] += prod

    @pl.when(k == pl.num_programs(2) - 1)
    def _():
        o_ref[...] = (acc_ref[...] + bias_ref[...]).astype(o_ref.dtype)


def matmul_bias(a, b, bias, *, tm=512, tn=256, tk=512, out_dtype=jnp.float32):
    """a: [M, K], b: [K, N], bias: [1, N]  ->  [M, N] = a @ b + bias."""
    M, K = a.shape
    Kb, N = b.shape
    assert K == Kb and bias.shape == (1, N)

    sub_m = 16 if a.dtype == jnp.bfloat16 else 8
    tm = min(tm, _round_up(M, sub_m))
    tn = min(tn, _round_up(N, 128))
    tk = min(tk, _round_up(K, 128))
    Mp, Kp, Np = _round_up(M, tm), _round_up(K, tk), _round_up(N, tn)

    a_p = _pad2d(a, Mp, Kp)
    b_p = _pad2d(b, Kp, Np)
    bias_p = _pad2d(bias, 1, Np)

    # Explicit VMEM budget: double-buffered in/out blocks + f32 accumulator.
    vmem = (2 * tm * tk * a_p.dtype.itemsize
            + 2 * tk * tn * b_p.dtype.itemsize
            + 2 * tn * bias_p.dtype.itemsize
            + 2 * tm * tn * np.dtype(out_dtype).itemsize
            + tm * tn * 4)

    out = pl.pallas_call(
        _matmul_bias_kernel,
        out_shape=jax.ShapeDtypeStruct((Mp, Np), out_dtype),
        grid_spec=pltpu.PrefetchScalarGridSpec(
            num_scalar_prefetch=0,
            grid=(Mp // tm, Np // tn, Kp // tk),
            in_specs=[
                pl.BlockSpec((tm, tk), lambda i, j, k: (i, k)),
                pl.BlockSpec((tk, tn), lambda i, j, k: (k, j)),
                pl.BlockSpec((1, tn), lambda i, j, k: (0, j)),
            ],
            out_specs=pl.BlockSpec((tm, tn), lambda i, j, k: (i, j)),
            scratch_shapes=[pltpu.VMEM((tm, tn), jnp.float32)],
        ),
        compiler_params=pltpu.CompilerParams(
            dimension_semantics=("parallel", "parallel", "arbitrary"),
            vmem_limit_bytes=_clip_vmem(2 * vmem + (1 << 20))),
    )(a_p, b_p, bias_p)
    return out[:M, :N]


# --------------------------------------------------------------------------
# Serial LSTM recurrence (phase 2): only h @ W_hh per step; FC hoisted out.
# --------------------------------------------------------------------------
def _lstm_recurrence_kernel(pre_ref, whh_ref, hs_ref, h_ref, c_ref):
    """pre_ref: [TC, Bb, 4H] bf16 (= x@W_ih + b), whh_ref: [H, 4H] bf16,
    hs_ref: [TC, Bb, H]; h_ref/c_ref: [Bb, H] f32 scratch carried across the
    (arbitrary) time axis; grid = (batch_chunks, time_chunks)."""
    H = whh_ref.shape[0]
    TC = pre_ref.shape[0]

    @pl.when(pl.program_id(1) == 0)
    def _():  # PyTorch default: zero initial (h, c), per batch chunk
        h_ref[...] = jnp.zeros_like(h_ref)
        c_ref[...] = jnp.zeros_like(c_ref)

    def step(t, carry):
        h_b = h_ref[...].astype(jnp.bfloat16)        # bf16 operand for the MXU
        pre_t = pre_ref[t].astype(jnp.float32)       # single upcast per step

        # Per-gate Hp-wide matmuls: EUP (sigmoid/tanh) of earlier gates
        # overlaps the MXU pushes of later gates. PyTorch order: i, f, g, o;
        # H is a multiple of 128 -> every slice is lane-aligned.
        def gate(gi):
            return pre_t[:, gi * H:(gi + 1) * H] + jnp.dot(
                h_b, whh_ref[:, gi * H:(gi + 1) * H],
                preferred_element_type=jnp.float32)

        i = jax.nn.sigmoid(gate(0))
        f = jax.nn.sigmoid(gate(1))
        g = jnp.tanh(gate(2))
        o = jax.nn.sigmoid(gate(3))

        c_new = f * c_ref[...] + i * g               # f32 state
        h_new = o * jnp.tanh(c_new)
        c_ref[...] = c_new
        h_ref[...] = h_new
        hs_ref[t] = h_new.astype(hs_ref.dtype)
        return carry

    lax.fori_loop(0, TC, step, 0, unroll=4)


# --------------------------------------------------------------------------
# Decoder forward
# --------------------------------------------------------------------------
def decoder_forward(features, captions, params, *, compute_dtype=jnp.bfloat16):
    """features: [B, E] f32, captions: [B, L] int32 -> logits [B, L, V] f32."""
    emb = params["embedding"]          # [V, E]
    w_ih = params["w_ih"]              # [E, 4H]
    w_hh = params["w_hh"]              # [H, 4H]
    b = params["b"]                    # [1, 4H]  (b_ih + b_hh)
    w_fc = params["w_fc"]              # [H, V]
    b_fc = params["b_fc"]              # [1, V]

    E = emb.shape[1]
    H = w_hh.shape[0]
    V = w_fc.shape[1]
    B, L = captions.shape
    T = L                              # 1 feature step + (L-1) caption tokens

    # Glue JAX: embedding gather + concat (data-dependent gather stays in JAX).
    cap_embed = jnp.take(emb, captions[:, :-1], axis=0)             # [B, L-1, E]
    x = jnp.concatenate([features[:, None, :], cap_embed], axis=1)  # [B, T, E]
    x = jnp.transpose(x, (1, 0, 2)).astype(jnp.float32)             # [T, B, E]

    # Lane/sublane-friendly padding.  B -> 16 (bf16 packs 16 rows per vreg),
    # H -> 128 so gate slices are lane-aligned.
    Bp = _round_up(B, 16)
    Hp = _round_up(H, 128)
    cbytes = np.dtype(compute_dtype).itemsize

    # Batch chunks: split Bp across the two v7x TensorCores when big enough
    # (each core carries its own h/c scratch). 1 chunk on v5e/v6e-sized batches.
    NB = 2 if (Bp >= 32 and Bp % 32 == 0) else 1
    Bb = Bp // NB

    # Timesteps per phase-2 chunk, sized from the VMEM budget (v7x has 64 MiB
    # physical VMEM -> roughly half the v5e/v6e chunk).
    budget = _vmem_capacity_bytes() // 8
    per_t = Bb * 4 * Hp * cbytes * 2 + Bb * Hp * cbytes * 2   # pre + hs, 2x buffered
    TC = int(max(1, min(T, 256, budget // per_t)))
    Tp = _round_up(T, TC)

    x_p = jnp.pad(x, ((0, Tp - T), (0, Bp - B), (0, 0)))

    # Pad weights per-gate so the [i|f|g|o] structure is preserved. Zero-padded
    # hidden units stay exactly 0 through the recurrence (pre-activation 0 ->
    # i=f=o=0.5, g=0 with c0=h0=0).
    w_ih_p = jnp.pad(w_ih.reshape(E, 4, H),
                     ((0, 0), (0, 0), (0, Hp - H))).reshape(E, 4 * Hp)
    w_hh_p = jnp.pad(w_hh.reshape(H, 4, H),
                     ((0, Hp - H), (0, 0), (0, Hp - H))).reshape(Hp, 4 * Hp)
    b_p = jnp.pad(b.reshape(1, 4, H),
                  ((0, 0), (0, 0), (0, Hp - H))).reshape(1, 4 * Hp)
    w_fc_p = jnp.pad(w_fc, ((0, Hp - H), (0, 0)))

    # ---- Phase 1: batched input projection, emitted in bf16 ------------------
    pre = matmul_bias(
        x_p.reshape(Tp * Bp, E).astype(compute_dtype),
        w_ih_p.astype(compute_dtype),
        b_p.astype(jnp.float32),
        out_dtype=compute_dtype,
    ).reshape(Tp, Bp, 4 * Hp)

    # ---- Phase 2: serial recurrence over (batch-chunk, T-chunk) grid ---------
    w_hh_b = w_hh_p.astype(compute_dtype)            # bf16 on the MXU
    whh_bytes = Hp * 4 * Hp * cbytes
    pre_blk = TC * Bb * 4 * Hp * cbytes
    hs_blk = TC * Bb * Hp * cbytes
    vmem_p2 = 2 * pre_blk + 2 * whh_bytes + 2 * hs_blk + 2 * Bb * Hp * 4

    hs = pl.pallas_call(
        _lstm_recurrence_kernel,
        out_shape=jax.ShapeDtypeStruct((Tp, Bp, Hp), compute_dtype),
        grid_spec=pltpu.PrefetchScalarGridSpec(
            num_scalar_prefetch=0,
            grid=(NB, Tp // TC),
            in_specs=[
                pl.BlockSpec((TC, Bb, 4 * Hp), lambda nb, t: (t, nb, 0)),
                _weight_spec((Hp, 4 * Hp), lambda nb, t: (0, 0), whh_bytes),
            ],
            out_specs=pl.BlockSpec((TC, Bb, Hp), lambda nb, t: (t, nb, 0)),
            scratch_shapes=[pltpu.VMEM((Bb, Hp), jnp.float32),
                            pltpu.VMEM((Bb, Hp), jnp.float32)],
        ),
        compiler_params=pltpu.CompilerParams(
            dimension_semantics=("parallel", "arbitrary"),
            vmem_limit_bytes=_clip_vmem(2 * vmem_p2 + (1 << 20))),
    )(pre, w_hh_b)

    # ---- Phase 3: vocab projection; big M tile cuts W_fc re-streaming --------
    # TODO(synk): emit logits in bf16 if the downstream loss tolerates it.
    logits = matmul_bias(
        hs.reshape(Tp * Bp, Hp),
        w_fc_p.astype(compute_dtype),
        b_fc.astype(jnp.float32),
        tm=512, tn=256,
        out_dtype=jnp.float32,
    ).reshape(Tp, Bp, V)

    logits = logits[:T, :B, :]
    return jnp.transpose(logits, (1, 0, 2))                         # [B, T, V]


# --------------------------------------------------------------------------
# Pure-JAX reference (replicates the PyTorch forward) for verification.
# --------------------------------------------------------------------------
def reference_forward(features, captions, params):
    emb = params["embedding"]
    cap_embed = jnp.take(emb, captions[:, :-1], axis=0)
    x = jnp.concatenate([features[:, None, :], cap_embed], axis=1)  # [B, T, E]
    H = params["w_hh"].shape[0]
    B = x.shape[0]

    def step(carry, x_t):
        h, c = carry
        gates = x_t @ params["w_ih"] + h @ params["w_hh"] + params["b"][0]
        i = jax.nn.sigmoid(gates[:, 0 * H:1 * H])
        f = jax.nn.sigmoid(gates[:, 1 * H:2 * H])
        g = jnp.tanh(gates[:, 2 * H:3 * H])
        o = jax.nn.sigmoid(gates[:, 3 * H:4 * H])
        c = f * c + i * g
        h = o * jnp.tanh(c)
        return (h, c), h

    h0 = jnp.zeros((B, H), jnp.float32)
    (_, _), hs = lax.scan(step, (h0, h0), jnp.transpose(x, (1, 0, 2)))
    out = hs @ params["w_fc"] + params["b_fc"][0]                   # [T, B, V]
    return jnp.transpose(out, (1, 0, 2))


def init_params(key, embed_size, hidden_size, vocab_size):
    k = jax.random.split(key, 7)
    s = 0.1
    return {
        "embedding": s * jax.random.normal(k[0], (vocab_size, embed_size), jnp.float32),
        "w_ih": s * jax.random.normal(k[1], (embed_size, 4 * hidden_size), jnp.float32),
        "w_hh": s * jax.random.normal(k[2], (hidden_size, 4 * hidden_size), jnp.float32),
        "b": s * jax.random.normal(k[3], (1, 4 * hidden_size), jnp.float32),
        "w_fc": s * jax.random.normal(k[4], (hidden_size, vocab_size), jnp.float32),
        "b_fc": s * jax.random.normal(k[5], (1, vocab_size), jnp.float32),
    }


if __name__ == "__main__":
    B, L = 2, 8            # batch, caption length (LSTM sequence length = L)
    E, H, V = 32, 32, 128  # embed_size, hidden_size, vocab_size

    key = jax.random.PRNGKey(0)
    k_feat, k_cap, k_par = jax.random.split(key, 3)

    features = jax.random.normal(k_feat, (B, E), jnp.float32)
    captions = jax.random.randint(k_cap, (B, L), 0, V, dtype=jnp.int32)
    params = init_params(k_par, E, H, V)

    out = jax.block_until_ready(decoder_forward(features, captions, params))
    ref = jax.block_until_ready(reference_forward(features, captions, params))

    assert out.shape == (B, L, V), out.shape
    max_err = float(jnp.max(jnp.abs(out - ref)))
    assert max_err < 3e-2, f"mismatch vs reference: max abs err {max_err}"

    print("KERNEL_OK")
</pallas_src>

<mosaic_0001>
module attributes {stable_mosaic.version = 11 : i64} {
  func.func @_matmul_bias_kernel(%arg0: i32, %arg1: i32, %arg2: i32, %arg3: memref<128x128xbf16, #tpu.memory_space<vmem>>, %arg4: memref<128x256xbf16, #tpu.memory_space<vmem>>, %arg5: memref<1x256xf32, #tpu.memory_space<vmem>>, %arg6: memref<128x256xbf16, #tpu.memory_space<vmem>>, %arg7: memref<128x256xf32, #tpu.memory_space<vmem>>) attributes {dimension_semantics = [#tpu.dimension_semantics<parallel>, #tpu.dimension_semantics<parallel>, #tpu.dimension_semantics<arbitrary>], iteration_bounds = array<i64: 1, 2, 1>, scalar_prefetch = 0 : i64, scratch_operands = 1 : i64, tpu.core_type = #tpu.core_type<tc>, window_params = [{transform_indices = @transform_0, window_bounds = array<i64: 128, 128>}, {transform_indices = @transform_1, window_bounds = array<i64: 128, 256>}, {transform_indices = @transform_2, window_bounds = array<i64: 1, 256>}, {transform_indices = @transform_3, window_bounds = array<i64: 128, 256>}]} {
    %c0 = arith.constant 0 : index
    %c0_0 = arith.constant 0 : index
    %0 = vector.load %arg3[%c0, %c0_0] : memref<128x128xbf16, #tpu.memory_space<vmem>>, vector<128x128xbf16>
    %c0_1 = arith.constant 0 : index
    %c0_2 = arith.constant 0 : index
    %1 = vector.load %arg4[%c0_1, %c0_2] : memref<128x256xbf16, #tpu.memory_space<vmem>>, vector<128x256xbf16>
    %cst = arith.constant dense<0.000000e+00> : vector<128x256xf32>
    %2 = tpu.matmul %0, %1, %cst {dimension_numbers = #tpu.dot_dimension_numbers<[1], [0], [0], [1], [0, 0, 1, 1], [], []>} : vector<128x128xbf16>, vector<128x256xbf16>, vector<128x256xf32> -> vector<128x256xf32>
    %c0_i32 = arith.constant 0 : i32
    %3 = arith.cmpi eq, %arg2, %c0_i32 : i32
    %4 = arith.extui %3 : i1 to i32
    %c0_i32_3 = arith.constant 0 : i32
    %5 = arith.cmpi ne, %4, %c0_i32_3 : i32
    scf.if %5 {
      %c0_8 = arith.constant 0 : index
      %c0_9 = arith.constant 0 : index
      %12 = vector.load %arg7[%c0_8, %c0_9] : memref<128x256xf32, #tpu.memory_space<vmem>>, vector<128x256xf32>
      tpu.vector_store %arg7[%c0_8, %c0_9], %2 {strides = array<i32>} : memref<128x256xf32, #tpu.memory_space<vmem>>, vector<128x256xf32>,
    } else {
    }
    %c0_i32_4 = arith.constant 0 : i32
    %6 = arith.cmpi sgt, %arg2, %c0_i32_4 : i32
    %7 = arith.extui %6 : i1 to i32
    %c0_i32_5 = arith.constant 0 : i32
    %8 = arith.cmpi ne, %7, %c0_i32_5 : i32
    scf.if %8 {
      %c0_8 = arith.constant 0 : index
      %c0_9 = arith.constant 0 : index
      %12 = vector.load %arg7[%c0_8, %c0_9] : memref<128x256xf32, #tpu.memory_space<vmem>>, vector<128x256xf32>
      %13 = arith.addf %12, %2 : vector<128x256xf32>
      %c0_10 = arith.constant 0 : index
      %c0_11 = arith.constant 0 : index
      %14 = vector.load %arg7[%c0_10, %c0_11] : memref<128x256xf32, #tpu.memory_space<vmem>>, vector<128x256xf32>
      tpu.vector_store %arg7[%c0_10, %c0_11], %13 {strides = array<i32>} : memref<128x256xf32, #tpu.memory_space<vmem>>, vector<128x256xf32>,
    } else {
    }
    %c0_i32_6 = arith.constant 0 : i32
    %9 = arith.cmpi eq, %arg2, %c0_i32_6 : i32
    %10 = arith.extui %9 : i1 to i32
    %c0_i32_7 = arith.constant 0 : i32
    %11 = arith.cmpi ne, %10, %c0_i32_7 : i32
    scf.if %11 {
      %c0_8 = arith.constant 0 : index
      %c0_9 = arith.constant 0 : index
      %12 = vector.load %arg7[%c0_8, %c0_9] : memref<128x256xf32, #tpu.memory_space<vmem>>, vector<128x256xf32>
      %c0_10 = arith.constant 0 : index
      %c0_11 = arith.constant 0 : index
      %13 = vector.load %arg5[%c0_10, %c0_11] : memref<1x256xf32, #tpu.memory_space<vmem>>, vector<1x256xf32>
      %14 = vector.broadcast %13 : vector<1x256xf32> to vector<128x256xf32>
      %15 = arith.addf %12, %14 : vector<128x256xf32>
      %16 = arith.truncf %15 : vector<128x256xf32> to vector<128x256xbf16>
      %c0_12 = arith.constant 0 : index
      %c0_13 = arith.constant 0 : index
      %17 = vector.load %arg6[%c0_12, %c0_13] : memref<128x256xbf16, #tpu.memory_space<vmem>>, vector<128x256xbf16>
      tpu.vector_store %arg6[%c0_12, %c0_13], %16 {strides = array<i32>} : memref<128x256xbf16, #tpu.memory_space<vmem>>, vector<128x256xbf16>,
    } else {
    }
    return
  }
  func.func @transform_0(%arg0: i32, %arg1: i32, %arg2: i32) -> (i32, i32) {
    %c0_i32 = arith.constant 0 : i32
    return %arg0, %arg2 : i32, i32
  }
  func.func @transform_1(%arg0: i32, %arg1: i32, %arg2: i32) -> (i32, i32) {
    %c0_i32 = arith.constant 0 : i32
    return %arg2, %arg1 : i32, i32
  }
  func.func @transform_2(%arg0: i32, %arg1: i32, %arg2: i32) -> (i32, i32) {
    %c0_i32 = arith.constant 0 : i32
    %c0_i32_0 = arith.constant 0 : i32
    return %c0_i32, %arg1 : i32, i32
  }
  func.func @transform_3(%arg0: i32, %arg1: i32, %arg2: i32) -> (i32, i32) {
    %c0_i32 = arith.constant 0 : i32
    return %arg0, %arg1 : i32, i32
  }
}

</mosaic_0001>

<bundles_post_ra>
// kernel: tpu_custom_call.1
= control target key start
LH: loop header
LB: loop body
LE: loop exit
PB: predicated region body
PF: predicated region fallthrough
CT: control target
= control target key end

     0   :  { %s1648_s0 = inlined_call_operand.hbm [shape: bf16[128,128], index: 0, kind: input, shape index: {}]   ;;  %s1649_s1 = inlined_call_operand.hbm [shape: bf16[128,512], index: 1, kind: input, shape index: {}]   ;;  %s1650_s2 = inlined_call_operand.hbm [shape: f32[1,512], index: 2, kind: input, shape index: {}]   ;;  %s1651_s3 = inlined_call_operand.hbm [shape: bf16[128,512], index: 3, kind: output, shape index: {}]  }
   0x1   :  { %1652 = sst [smem:[#allocation13_spill]] %s1648_s0 }
   0x2   :  { %1653 = sst [smem:[#allocation14_spill]] %s1649_s1 }
   0x3   :  { %8 = vsyncpa [#allocation4], 0 }
   0x4   :  { %9 = vsyncpa [#allocation7], 0 }
   0x5   :  { %11 = vsyncpa [#allocation7 + $0x1], 0 }
   0x6   :  { %12 = vsyncpa [#allocation5], 0 }
   0x7   :  { %14 = vsyncpa [#allocation5 + $0x1], 0  ;;  %s1382_s12 = smov 0   ;;  %s1384_s13 = smov 0  }
   0x8   :  { %s1386_s14 = smov 0   ;;  %s1388_s15 = smov 0  }
   0x9   :  { %s1390_s16 = smov 0   ;;  %s1392_s17 = smov 0  }
   0xa LB: > { %s35_s18 = sadd.s32 1, %s1347_s16  ;;  %s76_s19 = sadd.s32 1, %s1339_s14  ;;  %s1351_s17 = sphi %s1392_s17, %s20_s17   ;;  %s1347_s16 = sphi %s1390_s16, %s1666_s16   ;;  %s1343_s15 = sphi %s1388_s15, %s1665_s15   ;;  %s1339_s14 = sphi %s1386_s14, %s1664_s14   ;;  %s1335_s13 = sphi %s1384_s13, %s1663_s13   ;;  %s1331_s12 = sphi %s1382_s12, %s1662_s12  }
   0xb   : > { %p37_p0 = scmp.ge.s32.totalorder %s35_s18, 2  ;;  %p83_p1 = scmp.ne.s32.totalorder %s1339_s14, %s1335_s13 }
   0xc   : > { %p84_p2 = scmp.eq.s32.totalorder %s1351_s17, 0  ;;  %p935_p3 = scmp.ge.s32.totalorder %s1351_s17, 2 }
   0xd   : > { %s1668_s18 = smov (%p37_p0, %s35_s18), 0  ;;  %p1115_p5 = scmp.lt.s32.totalorder %s1351_s17, 2 }
   0xe   : > { %p1423_p4 = por %p84_p2, %p83_p1  ;;  %s72_s21 = ssub.s32 %s1347_s16, %s1668_s18 }
   0xf   : > { %s185_s22 = sand.u32 1, %s1351_s17   ;;  %p74_p6 = scmp.eq.s32.totalorder %s72_s21, 0 }
  0x10   : > { %s187_s23 = sand.u32 1, %s1339_s14   ;;  %s1047_s24 = sshll.u32 %s1347_s16, 3 }
  0x11   : > { %s1434_s25 = scalar_select %p74_p6, %s1339_s14, %s76_s19  }
  0x12   : > { %s936_s26 = sshll.u32 %s187_s23, 7  ;;  %s1655_s1 = sld [smem:[#allocation14_spill]] }
  0x13   : > { %s189_s4 = scalar_lea.vmem [#allocation6], %s936_s26  ;;  %p1445_p7 = pnand %p1115_p5, %p1423_p4 }
  0x14   : > { %s200_s5 = sshll.u32 %s189_s4, 4  ;;  %s1449_s7 = scalar_lea.sflag [#allocation7], %s185_s22  ;;  %s201_s5 = int_to_ptr.vmem [resolvable:$true] %s200_s5 }
  0x15   : > { %s1353_s8 = smov 256   ;;  %s1354_s9 = smov 128  }
  0x16   : > { %s1355_s10 = smov 8   ;;  %s1455_s11 = sadd.s32 4294967295, %s1351_s17  }
  0x17   : > { %s932_s19 = sadd.s32 4294967294, %s1351_s17   ;;  %p89_p8 = scmp.ne.s32.totalorder %s1335_s13, %s1331_s12 }
  0x18   : > { %s197_s29 = scalar_lea.hbm %s1655_s1, %s1047_s24  ;;  %p90_p9 = scmp.eq.s32.totalorder %s1455_s11, 0 }
  0x19   : > { %s198_s30 = sshll.u32 %s197_s29, 4  ;;  %p141_p10 = scmp.eq.s32.totalorder %s1455_s11, 1  ;;  %s199_s30 = int_to_ptr.hbm [resolvable:$true] %s198_s30 }
  0x1a   : > { %1106 = dma.hbm_to_vmem [thread:$0]  (!%p1445_p7), %s199_s30, 2048, %s201_s5, %s1449_s7, %s1353_s8, %s1354_s9, %s1355_s10  }
  0x1b   : > { %p147_p11 = scmp.eq.s32.totalorder %s932_s19, 1  ;;  %p1464_p12 = por %p90_p9, %p89_p8 }
  0x1c   : > { %p933_p13 = scmp.ge.s32.totalorder %s1351_s17, 1  ;;  %p1472_p0 = por %p141_p10, %p83_p1 }
  0x1d   : > { %p1476_p2 = por %p147_p11, %p89_p8  ;;  %p154_p4 = scmp.lt.s32.totalorder %s1351_s17, 3 }
  0x1e   : > { %s1660_s0 = sld [smem:[#allocation13_spill]]  ;;  %s1356_s29 = smov [#allocation3]  }
  0x1f   : > { %p1484_p5 = pnand %p933_p13, %p154_p4  ;;  %s171_s30 = sshll.u32 %s1356_s29, 4  ;;  %s172_s30 = int_to_ptr.vmem [resolvable:$true] %s171_s30 }
  0x20   : > { %s939_s4 = sshll.u32 %s187_s23, 1  ;;  %s940_s5 = sshll.u32 %s1347_s16, 1 }
  0x21   : > { %p1099_p1 = pneg %p1484_p5  ;;  %s214_s8 = scalar_lea.vmem [#allocation8], %s939_s4 }
  0x22   : > { %s222_s9 = sshll.u32 %s214_s8, 4  ;;  %s218_s24 = scalar_lea.hbm %s1650_s2, %s940_s5  ;;  %s223_s9 = int_to_ptr.vmem [resolvable:$true] %s222_s9 }
  0x23   : > { %p1100_p6 = pnand %p1099_p1, %p90_p9  ;;  %s1357_s26 = smov 64  }
  0x24   : > { %s169_s27 = sshll.u32 %s1660_s0, 4  ;;  %s1358_s0 = smov 4   ;;  %s170_s27 = int_to_ptr.hbm [resolvable:$true] %s169_s27 }
  0x25   : > { %1102 = dma.hbm_to_vmem [thread:$0]  (!%p1100_p6), %s170_s27, 1024, %s172_s30, [#allocation4], %s1357_s26, %s1357_s26, %s1358_s0  }
  0x26   : > { %s220_s1 = sshll.u32 %s218_s24, 4  ;;  %231 = sbr.rel (%p1484_p5) target bundleno = 280 (0x118), region = 32  ;;  %s221_s1 = int_to_ptr.hbm [resolvable:$true] %s220_s1 }
  0x27   : > { %1109 = dma.hbm_to_vmem [thread:$0]  (!%p1445_p7), %s221_s1, 32, %s223_s9, %s1449_s7  }
  0x2b   : > { %1318 = dma.done.wait (%p90_p9), [#allocation4], 1024  }
  0x2c   : > { %1320 = vsyncadd (%p90_p9), [#allocation4], 4294966272  ;;  %s238_s23 = sand.u32 1, %s1455_s11   ;;  %s1509_s29 = sand.u32 1, %s1335_s13  }
  0x2d   : > { %s943_s0 = sshll.u32 %s1509_s29, 7  ;;  %s239_s6 = scalar_lea.sflag [#allocation7], %s238_s23 }
  0x2e   : > { %s1514_s1 = scalar_lea.vmem [#allocation6], %s943_s0 }
  0x2f   : > { %1322 = dma.done.wait (%p1464_p12), %s239_s6, 2080  }
  0x30   : > { %1324 = vsyncadd (%p1464_p12), %s239_s6, 4294965216  ;;  %v1036_v0 = vld [vmem:[%s1514_s1 + $0x70] sm:$0xf]  ;;  %v1071_v1 = vld [vmem:[%s1514_s1 + $0x74] sm:$0xf0]  ;;  %s944_s7 = sshll.u32 %s1509_s29, 1 }
  0x31   : > { %v1070_v2 = vld [vmem:[%s1514_s1 + $0x74] sm:$0xf]  ;;  %v1037_v3 = vor.u32 %v1071_v1, %v1036_v0  ;;  %v1038_v4 = vld [vmem:[%s1514_s1 + $0x78] sm:$0xf0]  ;;  %v1028_v5 = vld [vmem:[%s1514_s1 + $0x60] sm:$0xf] }
  0x32   : > { %v1069_v6 = vld [vmem:[%s1514_s1 + $0x64] sm:$0xf0]  ;;  %v1041_v7 = vor.u32 %v1070_v2, %v1038_v4  ;;  %v1068_v8 = vld [vmem:[%s1514_s1 + $0x64] sm:$0xf]  ;;  %v1030_v9 = vld [vmem:[%s1514_s1 + $0x68] sm:$0xf0] }
  0x33   : > { %447 = vmatpush.bf16.msra.mxu0 %v1037_v3  ;;  %1073 = vmatpush.bf16.msra.mxu2 %v1037_v3  ;;  %v1029_v10 = vor.u32 %v1069_v6, %v1028_v5  ;;  %v1033_v11 = vor.u32 %v1068_v8, %v1030_v9  ;;  %v1020_v12 = vld [vmem:[%s1514_s1 + $0x50] sm:$0xf]  ;;  %v1067_v13 = vld [vmem:[%s1514_s1 + $0x54] sm:$0xf0]  ;;  %v1066_v14 = vld [vmem:[%s1514_s1 + $0x54] sm:$0xf] }
  0x34   : > { %496 = vmatpush.bf16.msra.mxu1 %v1041_v7  ;;  %1081 = vmatpush.bf16.msra.mxu3 %v1041_v7  ;;  %v1022_v15 = vld [vmem:[%s1514_s1 + $0x58] sm:$0xf0]  ;;  %v1021_v16 = vor.u32 %v1067_v13, %v1020_v12  ;;  %v1012_v18 = vld [vmem:[%s1514_s1 + $0x40] sm:$0xf]  ;;  %v1065_v19 = vld [vmem:[%s1514_s1 + $0x44] sm:$0xf0] }
  0x35   : > { %v1025_v17 = vor.u32 %v1066_v14, %v1022_v15  ;;  %v1064_v20 = vld [vmem:[%s1514_s1 + $0x44] sm:$0xf]  ;;  %v1014_v21 = vld [vmem:[%s1514_s1 + $0x48] sm:$0xf0]  ;;  %v1013_v22 = vor.u32 %v1065_v19, %v1012_v18  ;;  %v1004_v24 = vld [vmem:[%s1514_s1 + $0x30] sm:$0xf] }
  0x36   : > { %v1017_v23 = vor.u32 %v1064_v20, %v1014_v21  ;;  %v1063_v25 = vld [vmem:[%s1514_s1 + $0x34] sm:$0xf0]  ;;  %v1062_v26 = vld [vmem:[%s1514_s1 + $0x34] sm:$0xf]  ;;  %v1006_v27 = vld [vmem:[%s1514_s1 + $0x38] sm:$0xf0] }
  0x37   : > { %448 = vmatpush.bf16.msra.mxu0 %v1029_v10  ;;  %1074 = vmatpush.bf16.msra.mxu2 %v1029_v10  ;;  %v1005_v28 = vor.u32 %v1063_v25, %v1004_v24  ;;  %v1009_v29 = vor.u32 %v1062_v26, %v1006_v27  ;;  %v996_v30 = vld [vmem:[%s1514_s1 + $0x20] sm:$0xf]  ;;  %v1061_v31 = vld [vmem:[%s1514_s1 + $0x24] sm:$0xf0]  ;;  %v1060_v32 = vld [vmem:[%s1514_s1 + $0x24] sm:$0xf] }
  0x38   : > { %497 = vmatpush.bf16.msra.mxu1 %v1033_v11  ;;  %1082 = vmatpush.bf16.msra.mxu3 %v1033_v11  ;;  %v998_v33 = vld [vmem:[%s1514_s1 + $0x28] sm:$0xf0]  ;;  %v997_v34 = vor.u32 %v1061_v31, %v996_v30  ;;  %v988_v36 = vld [vmem:[%s1514_s1 + $0x10] sm:$0xf]  ;;  %v1059_v37 = vld [vmem:[%s1514_s1 + $0x14] sm:$0xf0] }
  0x39   : > { %v1001_v35 = vor.u32 %v1060_v32, %v998_v33  ;;  %v1058_v38 = vld [vmem:[%s1514_s1 + $0x14] sm:$0xf]  ;;  %v990_v39 = vld [vmem:[%s1514_s1 + $0x18] sm:$0xf0]  ;;  %v989_v40 = vor.u32 %v1059_v37, %v988_v36  ;;  %v980_v42 = vld [vmem:[%s1514_s1] sm:$0xf] }
  0x3a   : > { %v993_v41 = vor.u32 %v1058_v38, %v990_v39  ;;  %v1057_v43 = vld [vmem:[%s1514_s1 + $0x4] sm:$0xf0]  ;;  %v1056_v44 = vld [vmem:[%s1514_s1 + $0x4] sm:$0xf]  ;;  %v982_v45 = vld [vmem:[%s1514_s1 + $0x8] sm:$0xf0] }
  0x3b   : > { %449 = vmatpush.bf16.msra.mxu0 %v1021_v16  ;;  %1075 = vmatpush.bf16.msra.mxu2 %v1021_v16  ;;  %v981_v46 = vor.u32 %v1057_v43, %v980_v42  ;;  %v985_v47 = vor.u32 %v1056_v44, %v982_v45  ;;  %v1048_v48 = vld [vmem:[#allocation3] sm:$0xff]  ;;  %v1049_v50 = vld [vmem:[#allocation3 + $0x8] sm:$0xff]  ;;  %v1050_v52 = vld [vmem:[#allocation3 + $0x10] sm:$0xff]  ;;  %s252_s11 = scalar_lea.vmem [#allocation8], %s944_s7  ;;  %s1561_s20 = scalar_lea.vmem [#allocation9], %s943_s0 }
  0x3c   : > { %498 = vmatpush.bf16.msra.mxu1 %v1025_v17  ;;  %1083 = vmatpush.bf16.msra.mxu3 %v1025_v17  ;;  %v1052_v49 = vld [vmem:[#allocation3 + $0x20] sm:$0xff]  ;;  %v1053_v51 = vld [vmem:[#allocation3 + $0x28] sm:$0xff]  ;;  %v1054_v53 = vld [vmem:[#allocation3 + $0x30] sm:$0xff]  ;;  %s1072_s27 = sshll.u32 %s1343_s15, 3  ;;  %s802_s5 = sshll.u32 %s1561_s20, 4  ;;  %s803_s5 = int_to_ptr.vmem [resolvable:$true] %s802_s5 }
  0x3d   : > { %v1051_v54 = vld [vmem:[#allocation3 + $0x18] sm:$0xff]  ;;  %v716_v56 = vld [vmem:[%s252_s11] sm:$0x3]  ;;  %s801_s4 = scalar_lea.hbm %s1651_s3, %s1072_s27  ;;  %s787_s15 = scalar_lea.sflag [#allocation5], %s1509_s29 }
  0x3e   : > { %v1055_v55 = vld [vmem:[#allocation3 + $0x38] sm:$0xff]  ;;  %v1553_v57 = vperm.slane %v716_v56, 0  ;;  %v1555_v58 = vperm.slane %v716_v56, 1  ;;  %s804_s8 = sshll.u32 %s801_s4, 4  ;;  %s1285_s26 = scalar_lea.hbm %s1651_s3, 256  ;;  %s805_s8 = int_to_ptr.hbm [resolvable:$true] %s804_s8 }
  0x3f   : > { %450 = vmatpush.bf16.msra.mxu0 %v1013_v22  ;;  %1076 = vmatpush.bf16.msra.mxu2 %v1013_v22  ;;  %s1279_s9 = sshra.s32 %s805_s8, 4  ;;  %s1280_s9 = int_to_ptr.hbm [resolvable:$true] %s1279_s9 }
  0x40   : > { %499 = vmatpush.bf16.msra.mxu1 %v1017_v23  ;;  %1084 = vmatpush.bf16.msra.mxu3 %v1017_v23  ;;  %s1281_s10 = scalar_lea.hbm %s1280_s9, 128  ;;  %p1286_p10 = scmp.lt.s32.totalorder %s1280_s9, %s1651_s3 }
  0x41   : > { %p1282_p7 = scmp.ne.s32.totalorder %s1280_s9, %s1281_s10  ;;  %p1287_p11 = scmp.lt.s32.totalorder %s1285_s26, %s1281_s10 }
  0x43   : > { %451 = vmatpush.bf16.msra.mxu0 %v1005_v28  ;;  %1077 = vmatpush.bf16.msra.mxu2 %v1005_v28  ;;  %p1283_p8 = pnand %p1282_p7, %p1472_p0  ;;  %p1288_p12 = por %p1287_p11, %p1286_p10 }
  0x44   : > { %500 = vmatpush.bf16.msra.mxu1 %v1009_v29  ;;  %1085 = vmatpush.bf16.msra.mxu3 %v1009_v29 }
  0x45   : > { %p1284_p9 = pneg %p1283_p8 }
  0x47   : > { %452 = vmatpush.bf16.msra.mxu0 %v997_v34  ;;  %1078 = vmatpush.bf16.msra.mxu2 %v997_v34  ;;  %p1289_p13 = pnand %p1288_p12, %p1284_p9 }
  0x48   : > { %501 = vmatpush.bf16.msra.mxu1 %v1001_v35  ;;  %1086 = vmatpush.bf16.msra.mxu3 %v1001_v35 }
  0x4b   : > { %453 = vmatpush.bf16.msra.mxu0 %v989_v40  ;;  %1079 = vmatpush.bf16.msra.mxu2 %v989_v40 }
  0x4c   : > { %502 = vmatpush.bf16.msra.mxu1 %v993_v41  ;;  %1087 = vmatpush.bf16.msra.mxu3 %v993_v41 }
  0x4f   : > { %454 = vmatpush.bf16.msra.mxu0 %v981_v46  ;;  %1080 = vmatpush.bf16.msra.mxu2 %v981_v46 }
  0x50   : > { %503 = vmatpush.bf16.msra.mxu1 %v985_v47  ;;  %1088 = vmatpush.bf16.msra.mxu3 %v985_v47 }
  0x52   : > { %455 = vmatmul.bf16.vlgmr.msra.gmra.mxu0 %v1048_v48  ;;  %475 = vmatmul.bf16.vlgmr.msra.gmra.mxu2 %v1052_v49 }
  0x53   : > { %504 = vmatmul.bf16.vlgmr.msra.gmra.mxu1 %v1048_v48  ;;  %524 = vmatmul.bf16.vlgmr.msra.gmra.mxu3 %v1052_v49 }
  0x62   : > { %460 = vmatmul.bf16.gmra.mxu0 %v1049_v50  ;;  %480 = vmatmul.bf16.gmra.mxu2 %v1053_v51 }
  0x63   : > { %509 = vmatmul.bf16.gmra.mxu1 %v1049_v50  ;;  %529 = vmatmul.bf16.gmra.mxu3 %v1053_v51 }
  0x72   : > { %465 = vmatmul.bf16.gmra.mxu0 %v1050_v52  ;;  %485 = vmatmul.bf16.gmra.mxu2 %v1054_v53 }
  0x73   : > { %514 = vmatmul.bf16.gmra.mxu1 %v1050_v52  ;;  %534 = vmatmul.bf16.gmra.mxu3 %v1054_v53 }
  0x82   : > { %470 = vmatmul.bf16.gmra.mxu0 %v1051_v54  ;;  %490 = vmatmul.bf16.gmra.mxu2 %v1055_v55 }
  0x83   : > { %519 = vmatmul.bf16.gmra.mxu1 %v1051_v54  ;;  %539 = vmatmul.bf16.gmra.mxu3 %v1055_v55 }
  0xcf   : > { %v456_v59 = vpop.f32.mrf.mxu0 }
  0xd0   : > { %v722_v60 = vadd.f32 %v1553_v57, %v456_v59  ;;  %v505_v61 = vpop.f32.mrf.mxu1 }
  0xd1   : > { %v723_v62 = vadd.f32 %v1555_v58, %v505_v61 }
  0xd3   : > { %v754_v63 = vpack.c.bf16 %v723_v62, %v722_v60 }
  0xd5   : > { %770 = vst [vmem:[%s1561_s20] sm:$0xff] %v754_v63  ;;  %v476_v0 = vpop.f32.mrf.mxu2 }
  0xd6   : > { %v738_v1 = vadd.f32 %v1553_v57, %v476_v0  ;;  %v525_v2 = vpop.f32.mrf.mxu3 }
  0xd7   : > { %v739_v3 = vadd.f32 %v1555_v58, %v525_v2  ;;  %v458_v4 = vpop.f32.mrf.mxu0 }
  0xd8   : > { %v724_v5 = vadd.f32 %v1553_v57, %v458_v4  ;;  %v507_v6 = vpop.f32.mrf.mxu1 }
  0xd9   : > { %v762_v7 = vpack.c.bf16 %v739_v3, %v738_v1  ;;  %v725_v8 = vadd.f32 %v1555_v58, %v507_v6 }
  0xdb   : > { %778 = vst [vmem:[%s1561_s20 + $0x40] sm:$0xff] %v762_v7  ;;  %v755_v9 = vpack.c.bf16 %v725_v8, %v724_v5 }
  0xdd   : > { %771 = vst [vmem:[%s1561_s20 + $0x8] sm:$0xff] %v755_v9  ;;  %v478_v10 = vpop.f32.mrf.mxu2 }
  0xde   : > { %v740_v11 = vadd.f32 %v1553_v57, %v478_v10  ;;  %v527_v12 = vpop.f32.mrf.mxu3 }
  0xdf   : > { %v741_v13 = vadd.f32 %v1555_v58, %v527_v12  ;;  %v461_v14 = vpop.f32.mrf.mxu0 }
  0xe0   : > { %v726_v15 = vadd.f32 %v1553_v57, %v461_v14  ;;  %v510_v16 = vpop.f32.mrf.mxu1 }
  0xe1   : > { %v763_v17 = vpack.c.bf16 %v741_v13, %v740_v11  ;;  %v727_v18 = vadd.f32 %v1555_v58, %v510_v16 }
  0xe3   : > { %779 = vst [vmem:[%s1561_s20 + $0x48] sm:$0xff] %v763_v17  ;;  %v756_v19 = vpack.c.bf16 %v727_v18, %v726_v15 }
  0xe5   : > { %772 = vst [vmem:[%s1561_s20 + $0x10] sm:$0xff] %v756_v19  ;;  %v481_v20 = vpop.f32.mrf.mxu2 }
  0xe6   : > { %v742_v21 = vadd.f32 %v1553_v57, %v481_v20  ;;  %v530_v22 = vpop.f32.mrf.mxu3 }
  0xe7   : > { %v743_v23 = vadd.f32 %v1555_v58, %v530_v22  ;;  %v463_v24 = vpop.f32.mrf.mxu0 }
  0xe8   : > { %v728_v25 = vadd.f32 %v1553_v57, %v463_v24  ;;  %v512_v26 = vpop.f32.mrf.mxu1 }
  0xe9   : > { %v764_v27 = vpack.c.bf16 %v743_v23, %v742_v21  ;;  %v729_v28 = vadd.f32 %v1555_v58, %v512_v26 }
  0xeb   : > { %780 = vst [vmem:[%s1561_s20 + $0x50] sm:$0xff] %v764_v27  ;;  %v757_v29 = vpack.c.bf16 %v729_v28, %v728_v25 }
  0xed   : > { %773 = vst [vmem:[%s1561_s20 + $0x18] sm:$0xff] %v757_v29  ;;  %v483_v30 = vpop.f32.mrf.mxu2 }
  0xee   : > { %v744_v31 = vadd.f32 %v1553_v57, %v483_v30  ;;  %v532_v32 = vpop.f32.mrf.mxu3 }
  0xef   : > { %v745_v33 = vadd.f32 %v1555_v58, %v532_v32  ;;  %v466_v34 = vpop.f32.mrf.mxu0 }
  0xf0   : > { %v730_v35 = vadd.f32 %v1553_v57, %v466_v34  ;;  %v515_v36 = vpop.f32.mrf.mxu1 }
  0xf1   : > { %v765_v37 = vpack.c.bf16 %v745_v33, %v744_v31  ;;  %v731_v38 = vadd.f32 %v1555_v58, %v515_v36 }
  0xf3   : > { %781 = vst [vmem:[%s1561_s20 + $0x58] sm:$0xff] %v765_v37  ;;  %v758_v39 = vpack.c.bf16 %v731_v38, %v730_v35 }
  0xf5   : > { %774 = vst [vmem:[%s1561_s20 + $0x20] sm:$0xff] %v758_v39  ;;  %v486_v40 = vpop.f32.mrf.mxu2 }
  0xf6   : > { %v746_v41 = vadd.f32 %v1553_v57, %v486_v40  ;;  %v535_v42 = vpop.f32.mrf.mxu3 }
  0xf7   : > { %v747_v43 = vadd.f32 %v1555_v58, %v535_v42  ;;  %v468_v44 = vpop.f32.mrf.mxu0 }
  0xf8   : > { %v732_v45 = vadd.f32 %v1553_v57, %v468_v44  ;;  %v517_v46 = vpop.f32.mrf.mxu1 }
  0xf9   : > { %v766_v47 = vpack.c.bf16 %v747_v43, %v746_v41  ;;  %v733_v48 = vadd.f32 %v1555_v58, %v517_v46 }
  0xfb   : > { %782 = vst [vmem:[%s1561_s20 + $0x60] sm:$0xff] %v766_v47  ;;  %v759_v49 = vpack.c.bf16 %v733_v48, %v732_v45 }
  0xfd   : > { %775 = vst [vmem:[%s1561_s20 + $0x28] sm:$0xff] %v759_v49  ;;  %v488_v50 = vpop.f32.mrf.mxu2 }
  0xfe   : > { %v748_v51 = vadd.f32 %v1553_v57, %v488_v50  ;;  %v537_v52 = vpop.f32.mrf.mxu3 }
  0xff   : > { %v749_v53 = vadd.f32 %v1555_v58, %v537_v52  ;;  %v471_v54 = vpop.f32.mrf.mxu0 }
 0x100   : > { %v734_v55 = vadd.f32 %v1553_v57, %v471_v54  ;;  %v520_v56 = vpop.f32.mrf.mxu1 }
 0x101   : > { %v767_v59 = vpack.c.bf16 %v749_v53, %v748_v51  ;;  %v735_v60 = vadd.f32 %v1555_v58, %v520_v56 }
 0x103   : > { %783 = vst [vmem:[%s1561_s20 + $0x68] sm:$0xff] %v767_v59  ;;  %v760_v61 = vpack.c.bf16 %v735_v60, %v734_v55 }
 0x105   : > { %776 = vst [vmem:[%s1561_s20 + $0x30] sm:$0xff] %v760_v61  ;;  %v491_v62 = vpop.f32.mrf.mxu2 }
 0x106   : > { %v750_v63 = vadd.f32 %v1553_v57, %v491_v62  ;;  %v540_v0 = vpop.f32.mrf.mxu3 }
 0x107   : > { %v751_v1 = vadd.f32 %v1555_v58, %v540_v0  ;;  %v473_v2 = vpop.f32.mrf.mxu0 }
 0x108   : > { %v736_v3 = vadd.f32 %v1553_v57, %v473_v2  ;;  %v522_v4 = vpop.f32.mrf.mxu1 }
 0x109   : > { %v768_v5 = vpack.c.bf16 %v751_v1, %v750_v63  ;;  %v737_v6 = vadd.f32 %v1555_v58, %v522_v4 }
 0x10b   : > { %784 = vst [vmem:[%s1561_s20 + $0x70] sm:$0xff] %v768_v5  ;;  %v761_v7 = vpack.c.bf16 %v737_v6, %v736_v3 }
 0x10d   : > { %777 = vst [vmem:[%s1561_s20 + $0x38] sm:$0xff] %v761_v7  ;;  %v493_v8 = vpop.f32.mrf.mxu2 }
 0x10e   : > { %v752_v9 = vadd.f32 %v1553_v57, %v493_v8  ;;  %v542_v10 = vpop.f32.mrf.mxu3 }
 0x10f   : > { %v753_v11 = vadd.f32 %v1555_v58, %v542_v10 }
 0x111   : > { %v769_v12 = vpack.c.bf16 %v753_v11, %v752_v9 }
 0x113   : > { %785 = vst [vmem:[%s1561_s20 + $0x78] sm:$0xff] %v769_v12 }
 0x114   : > { %1292 = shalt.err (!%p1289_p13)
}
 0x115   : > { %s1359_s29 = smov 128   ;;  %s1360_s6 = smov 256  }
 0x116   : > { %s1361_s1 = smov 8  }
 0x117   : > { %1097 = dma.vmem_to_hbm [thread:$0]  (%p1472_p0), %s803_s5, 2048, %s805_s8, %s787_s15, %s1359_s29, %s1360_s6, %s1361_s1  }
 0x118 PF: > { %s819_s7 = sand.u32 1, %s1331_s12   ;;  %p1111_p4 = pnand %p935_p3, %p1476_p2 }
 0x119   : > { %s820_s11 = scalar_lea.sflag [#allocation5], %s819_s7 }
 0x11a   : > { %p1112_p5 = pneg %p1111_p4 }
 0x11c   : > { %1326 = dma.done.wait (%p1112_p5), %s820_s11, 2048  }
 0x11d   : > { %1328 = vsyncadd (%p1112_p5), %s820_s11, 4294965248  ;;  %s20_s17 = sadd.s32 1, %s1351_s17   ;;  %s1662_s12 = smov %s1335_s13 }
 0x11e   : > { %p17_p1 = scmp.ge.s32.totalorder %s20_s17, 4   ;;  %s1663_s13 = smov %s1339_s14 }
 0x11f   : > { %s1664_s14 = smov %s1434_s25  ;;  %s1665_s15 = smov %s1347_s16 }
 0x120   : > { %s1666_s16 = smov %s1668_s18  ;;  %19 = sbr.rel (!%p17_p1) target bundleno = 10 (0xa), region = 106 }
 0x125   :  { %826 = vsyncpa [#allocation4], 1 }
 0x126   :  { %828 = vsyncpa [#allocation4 + $0x1], 1 }
 0x127   :  { %829 = vsyncpa [#allocation7], 1 }
 0x128   :  { %831 = vsyncpa [#allocation7 + $0x1], 1 }
 0x129   :  { %832 = vsyncpa [#allocation5], 1 }
 0x12a   :  { %834 = vsyncpa [#allocation5 + $0x1], 1 }

</bundles_post_ra>
